<compile_context>
chip_gen: v6e
topology: v6e:2x2x1
jax: 0.10.0
libtpu: 0.0.40
codegen_flags: <defaults>
</compile_context>

<pallas_src>
import functools

import jax
import jax.numpy as jnp
from jax import lax
from jax.experimental import pallas as pl
from jax.experimental.pallas import tpu as pltpu


def _round_up(v, m):
    return (v + m - 1) // m * m


def _choose_tile_hw(hw, c_pad, itemsize, budget_bytes=16 << 20):
    """Largest lane tile (multiple of 128, <=2048) whose double-buffered input
    block plus the two f32 accumulators stay within a conservative VMEM budget
    (works for v7x's 64 MiB physical VMEM as well as v5e/v6e)."""
    hw_lane = _round_up(hw, 128)
    for tile in (2048, 1024, 512, 256, 128):
        if tile > hw_lane:
            continue
        footprint = c_pad * tile * (2 * itemsize + 2 * 4)
        if footprint <= budget_bytes:
            return tile
    return 128


def _channel_att_kernel(x_ref, w_ref, o_ref, max_acc, sum_acc, *,
                        hw, tile_hw, mask_tail):
    """x_ref: (1, C_pad, TILE_HW) block of one batch element.
       w_ref: (C_pad, C_out) resident weight (fc.T, zero-padded rows).
       o_ref: (1, 1, C_out) softmax output for this batch element.
       max_acc / sum_acc: (C_pad, TILE_HW) f32 running accumulators."""
    k = pl.program_id(1)

    @pl.when(k == 0)
    def _init():
        max_acc[...] = jnp.full(max_acc.shape, -jnp.inf, dtype=jnp.float32)
        sum_acc[...] = jnp.zeros(sum_acc.shape, dtype=jnp.float32)

    x = x_ref[0].astype(jnp.float32)                     # (C_pad, TILE_HW)

    if mask_tail:
        # Remainder tile: padded lanes must not corrupt max (-inf) or sum (0).
        cols = lax.broadcasted_iota(jnp.int32, x.shape, 1) + k * tile_hw
        valid = cols < hw
        x_max = jnp.where(valid, x, -jnp.inf)
        x_sum = jnp.where(valid, x, 0.0)
    else:
        x_max = x
        x_sum = x

    # Pure VPU elementwise accumulation per tile (no per-tile XLU reduce).
    max_acc[...] = jnp.maximum(max_acc[...], x_max)
    sum_acc[...] = sum_acc[...] + x_sum

    @pl.when(k == pl.num_programs(1) - 1)
    def _finalize():
        maxp = jnp.max(max_acc[...], axis=-1, keepdims=True)   # (C_pad, 1)
        sump = jnp.sum(sum_acc[...], axis=-1, keepdims=True)   # (C_pad, 1)
        # mean uses the TRUE spatial size, not the padded one.
        pooled = maxp + sump * (1.0 / hw)                       # fc(max)+fc(avg)=fc(max+avg)
        # Skinny FC: broadcast-multiply + sublane reduce (skip MXU fill/drain).
        logits = jnp.sum(pooled * w_ref[...], axis=0, keepdims=True)  # (1, C_out)
        m = jnp.max(logits, axis=-1, keepdims=True)
        e = jnp.exp(logits - m)
        denom = jnp.sum(e, axis=-1, keepdims=True)
        o_ref[0] = (e * pl.reciprocal(denom, approx=True)).astype(o_ref.dtype)


def channel_att_forward(x, fc_weight):
    """x: (B, C, H, W).  fc_weight: (C_out, C) (PyTorch nn.Linear layout).
    Returns feature_weight: (B, C_out, 1, 1) float32."""
    B, C, H, W = x.shape
    C_out = fc_weight.shape[0]
    HW = H * W
    itemsize = jnp.dtype(x.dtype).itemsize

    C_pad = _round_up(C, 8)
    TILE_HW = _choose_tile_hw(HW, C_pad, itemsize)
    HW_pad = _round_up(HW, TILE_HW)
    num_hw_tiles = HW_pad // TILE_HW

    # Layout plumbing in glue (no pad / no copy in the common aligned case).
    x_flat = x.reshape(B, C, HW)
    if C_pad != C or HW_pad != HW:
        x_flat = jnp.pad(x_flat, ((0, 0), (0, C_pad - C), (0, HW_pad - HW)))
    w = fc_weight.T.astype(jnp.float32)                    # (C, C_out)
    if C_pad != C:
        w = jnp.pad(w, ((0, C_pad - C), (0, 0)))           # zero rows: padded channels contribute 0

    kernel = functools.partial(_channel_att_kernel,
                               hw=HW, tile_hw=TILE_HW,
                               mask_tail=(HW_pad != HW))

    # VMEM: double-buffered input tile + two f32 accumulators + weight/out.
    vmem_need = (2 * C_pad * TILE_HW * itemsize
                 + 2 * C_pad * TILE_HW * 4
                 + 2 * C_pad * C_out * 4
                 + (1 << 20))
    vmem_limit = int(min(64 << 20, max(16 << 20, 2 * vmem_need)))

    cost = pl.CostEstimate(
        flops=int(2 * B * C_pad * HW_pad + 2 * B * C_pad * C_out),
        transcendentals=int(B * C_out),
        bytes_accessed=int(x_flat.size * itemsize + w.size * 4 + B * C_out * 4),
    )

    out = pl.pallas_call(
        kernel,
        out_shape=jax.ShapeDtypeStruct((B, 1, C_out), jnp.float32),
        grid_spec=pltpu.PrefetchScalarGridSpec(
            num_scalar_prefetch=0,
            grid=(B, num_hw_tiles),
            in_specs=[
                # streamed activation tiles
                pl.BlockSpec((1, C_pad, TILE_HW), lambda b, k: (b, 0, k)),
                # weight: constant index_map -> DMA'd once, stays resident
                pl.BlockSpec((C_pad, C_out), lambda b, k: (0, 0)),
            ],
            out_specs=pl.BlockSpec((1, 1, C_out), lambda b, k: (b, 0, 0)),
            scratch_shapes=[
                pltpu.VMEM((C_pad, TILE_HW), jnp.float32),   # running max
                pltpu.VMEM((C_pad, TILE_HW), jnp.float32),   # running sum
            ],
        ),
        compiler_params=pltpu.CompilerParams(
            dimension_semantics=("parallel", "arbitrary"),
            vmem_limit_bytes=vmem_limit,
        ),
        cost_estimate=cost,
    )(x_flat, w)

    return out.reshape(B, C_out, 1, 1)


def _reference(x, fc_weight):
    """Pure-JAX reference mirroring the PyTorch forward exactly."""
    maxp = jnp.max(x, axis=(2, 3))                 # (B, C)
    avgp = jnp.mean(x, axis=(2, 3))                # (B, C)
    logits = maxp @ fc_weight.T + avgp @ fc_weight.T
    fw = jax.nn.softmax(logits, axis=1)            # nn.Softmax() on 2-D -> dim=1
    B = x.shape[0]
    return fw.reshape(B, -1, 1, 1)


if __name__ == "__main__":
    key = jax.random.PRNGKey(0)
    kx, kw = jax.random.split(key)

    # Small shapes consistent with the module: batch=2, low_channel=4, 16x16 spatial.
    B, C, H, W = 2, 4, 16, 16
    C_out = C // 2                                 # swap_att=False

    x = jax.random.normal(kx, (B, C, H, W), dtype=jnp.float32)
    bound = 1.0 / (C ** 0.5)
    fc_weight = jax.random.uniform(kw, (C_out, C), minval=-bound, maxval=bound,
                                   dtype=jnp.float32)

    out = channel_att_forward(x, fc_weight)
    out = jax.block_until_ready(out)

    ref = _reference(x, fc_weight)
    assert out.shape == (B, C_out, 1, 1), out.shape
    # tolerance relaxed slightly because the softmax denominator uses the
    # approximate EUP reciprocal (pl.reciprocal(..., approx=True)).
    assert jnp.allclose(out, ref, atol=2e-3, rtol=2e-3), (out, ref)

    print("KERNEL_OK")
</pallas_src>

<mosaic_0001>
module attributes {stable_mosaic.version = 11 : i64} {
  func.func @_channel_att_kernel(%arg0: i32, %arg1: i32, %arg2: memref<1x8x256xf32, #tpu.memory_space<vmem>>, %arg3: memref<8x2xf32, #tpu.memory_space<vmem>>, %arg4: memref<1x1x2xf32, #tpu.memory_space<vmem>>, %arg5: memref<8x256xf32, #tpu.memory_space<vmem>>, %arg6: memref<8x256xf32, #tpu.memory_space<vmem>>) attributes {dimension_semantics = [#tpu.dimension_semantics<parallel>, #tpu.dimension_semantics<arbitrary>], iteration_bounds = array<i64: 2, 1>, scalar_prefetch = 0 : i64, scratch_operands = 2 : i64, tpu.core_type = #tpu.core_type<tc>, window_params = [{transform_indices = @transform_0, window_bounds = array<i64: 1, 8, 256>}, {pipeline_mode = #tpu.pipeline_mode<synchronous>, transform_indices = @transform_1, window_bounds = array<i64: 8, 2>}, {transform_indices = @transform_2, window_bounds = array<i64: 1, 1, 2>}]} {
    %c0_i32 = arith.constant 0 : i32
    %0 = arith.cmpi eq, %arg1, %c0_i32 : i32
    %1 = arith.extui %0 : i1 to i32
    %c0_i32_0 = arith.constant 0 : i32
    %2 = arith.cmpi ne, %1, %c0_i32_0 : i32
    scf.if %2 {
      %cst = arith.constant 0xFF800000 : f32
      %14 = vector.broadcast %cst : f32 to vector<8x256xf32>
      %c0_13 = arith.constant 0 : index
      %c0_14 = arith.constant 0 : index
      %15 = vector.load %arg5[%c0_13, %c0_14] : memref<8x256xf32, #tpu.memory_space<vmem>>, vector<8x256xf32>
      tpu.vector_store %arg5[%c0_13, %c0_14], %14 {strides = array<i32>} : memref<8x256xf32, #tpu.memory_space<vmem>>, vector<8x256xf32>,
      %cst_15 = arith.constant 0.000000e+00 : f32
      %16 = vector.broadcast %cst_15 : f32 to vector<8x256xf32>
      %c0_16 = arith.constant 0 : index
      %c0_17 = arith.constant 0 : index
      %17 = vector.load %arg6[%c0_16, %c0_17] : memref<8x256xf32, #tpu.memory_space<vmem>>, vector<8x256xf32>
      tpu.vector_store %arg6[%c0_16, %c0_17], %16 {strides = array<i32>} : memref<8x256xf32, #tpu.memory_space<vmem>>, vector<8x256xf32>,
    } else {
    }
    %c0 = arith.constant 0 : index
    %c0_1 = arith.constant 0 : index
    %c0_2 = arith.constant 0 : index
    %3 = vector.load %arg2[%c0, %c0_1, %c0_2] : memref<1x8x256xf32, #tpu.memory_space<vmem>>, vector<1x8x256xf32>
    %4 = vector.shape_cast %3 : vector<1x8x256xf32> to vector<8x256xf32>
    %c0_3 = arith.constant 0 : index
    %c0_4 = arith.constant 0 : index
    %5 = vector.load %arg5[%c0_3, %c0_4] : memref<8x256xf32, #tpu.memory_space<vmem>>, vector<8x256xf32>
    %6 = arith.maximumf %5, %4 : vector<8x256xf32>
    %c0_5 = arith.constant 0 : index
    %c0_6 = arith.constant 0 : index
    %7 = vector.load %arg5[%c0_5, %c0_6] : memref<8x256xf32, #tpu.memory_space<vmem>>, vector<8x256xf32>
    tpu.vector_store %arg5[%c0_5, %c0_6], %6 {strides = array<i32>} : memref<8x256xf32, #tpu.memory_space<vmem>>, vector<8x256xf32>,
    %c0_7 = arith.constant 0 : index
    %c0_8 = arith.constant 0 : index
    %8 = vector.load %arg6[%c0_7, %c0_8] : memref<8x256xf32, #tpu.memory_space<vmem>>, vector<8x256xf32>
    %9 = arith.addf %8, %4 : vector<8x256xf32>
    %c0_9 = arith.constant 0 : index
    %c0_10 = arith.constant 0 : index
    %10 = vector.load %arg6[%c0_9, %c0_10] : memref<8x256xf32, #tpu.memory_space<vmem>>, vector<8x256xf32>
    tpu.vector_store %arg6[%c0_9, %c0_10], %9 {strides = array<i32>} : memref<8x256xf32, #tpu.memory_space<vmem>>, vector<8x256xf32>,
    %c0_i32_11 = arith.constant 0 : i32
    %11 = arith.cmpi eq, %arg1, %c0_i32_11 : i32
    %12 = arith.extui %11 : i1 to i32
    %c0_i32_12 = arith.constant 0 : i32
    %13 = arith.cmpi ne, %12, %c0_i32_12 : i32
    scf.if %13 {
      %c0_13 = arith.constant 0 : index
      %c0_14 = arith.constant 0 : index
      %14 = vector.load %arg5[%c0_13, %c0_14] : memref<8x256xf32, #tpu.memory_space<vmem>>, vector<8x256xf32>
      %cst = arith.constant dense<0xFF800000> : vector<8xf32>
      %15 = vector.multi_reduction <maximumf>, %14, %cst [1] : vector<8x256xf32> to vector<8xf32>
      %16 = vector.shape_cast %15 : vector<8xf32> to vector<8x1xf32>
      %c0_15 = arith.constant 0 : index
      %c0_16 = arith.constant 0 : index
      %17 = vector.load %arg6[%c0_15, %c0_16] : memref<8x256xf32, #tpu.memory_space<vmem>>, vector<8x256xf32>
      %cst_17 = arith.constant dense<0.000000e+00> : vector<8xf32>
      %18 = vector.multi_reduction <add>, %17, %cst_17 [1] : vector<8x256xf32> to vector<8xf32>
      %19 = vector.shape_cast %18 : vector<8xf32> to vector<8x1xf32>
      %cst_18 = arith.constant 3.906250e-03 : f32
      %20 = vector.broadcast %cst_18 : f32 to vector<8x1xf32>
      %21 = arith.mulf %19, %20 : vector<8x1xf32>
      %22 = arith.addf %16, %21 : vector<8x1xf32>
      %c0_19 = arith.constant 0 : index
      %c0_20 = arith.constant 0 : index
      %23 = vector.load %arg3[%c0_19, %c0_20] : memref<8x2xf32, #tpu.memory_space<vmem>>, vector<8x2xf32>
      %24 = vector.broadcast %22 : vector<8x1xf32> to vector<8x2xf32>
      %25 = arith.mulf %24, %23 : vector<8x2xf32>
      %cst_21 = arith.constant dense<0.000000e+00> : vector<2xf32>
      %26 = vector.multi_reduction <add>, %25, %cst_21 [0] : vector<8x2xf32> to vector<2xf32>
      %27 = vector.shape_cast %26 : vector<2xf32> to vector<1x2xf32>
      %cst_22 = arith.constant dense<0xFF800000> : vector<1xf32>
      %28 = vector.multi_reduction <maximumf>, %27, %cst_22 [1] : vector<1x2xf32> to vector<1xf32>
      %29 = vector.shape_cast %28 : vector<1xf32> to vector<1x1xf32>
      %30 = vector.broadcast %29 : vector<1x1xf32> to vector<1x2xf32>
      %31 = arith.subf %27, %30 : vector<1x2xf32>
      %32 = math.exp %31 : vector<1x2xf32>
      %cst_23 = arith.constant dense<0.000000e+00> : vector<1xf32>
      %33 = vector.multi_reduction <add>, %32, %cst_23 [1] : vector<1x2xf32> to vector<1xf32>
      %34 = vector.shape_cast %33 : vector<1xf32> to vector<1x1xf32>
      %35 = tpu.reciprocal %34 {approx = true} : vector<1x1xf32> -> vector<1x1xf32>
      %36 = vector.broadcast %35 : vector<1x1xf32> to vector<1x2xf32>
      %37 = arith.mulf %32, %36 : vector<1x2xf32>
      %c0_24 = arith.constant 0 : index
      %c0_25 = arith.constant 0 : index
      %c0_26 = arith.constant 0 : index
      %38 = vector.load %arg4[%c0_24, %c0_25, %c0_26] : memref<1x1x2xf32, #tpu.memory_space<vmem>>, vector<1x1x2xf32>
      %39 = vector.shape_cast %38 : vector<1x1x2xf32> to vector<1x2xf32>
      %40 = vector.shape_cast %37 : vector<1x2xf32> to vector<1x1x2xf32>
      tpu.vector_store %arg4[%c0_24, %c0_25, %c0_26], %40 {strides = array<i32>} : memref<1x1x2xf32, #tpu.memory_space<vmem>>, vector<1x1x2xf32>,
    } else {
    }
    return
  }
  func.func @transform_0(%arg0: i32, %arg1: i32) -> (i32, i32, i32) {
    %c0_i32 = arith.constant 0 : i32
    %c0_i32_0 = arith.constant 0 : i32
    return %arg0, %c0_i32, %arg1 : i32, i32, i32
  }
  func.func @transform_1(%arg0: i32, %arg1: i32) -> (i32, i32) {
    %c0_i32 = arith.constant 0 : i32
    %c0_i32_0 = arith.constant 0 : i32
    %c0_i32_1 = arith.constant 0 : i32
    return %c0_i32, %c0_i32_0 : i32, i32
  }
  func.func @transform_2(%arg0: i32, %arg1: i32) -> (i32, i32, i32) {
    %c0_i32 = arith.constant 0 : i32
    %c0_i32_0 = arith.constant 0 : i32
    %c0_i32_1 = arith.constant 0 : i32
    return %arg0, %c0_i32, %c0_i32_0 : i32, i32, i32
  }
}

</mosaic_0001>

<bundles_post_ra>
// kernel: tpu_custom_call.1
= control target key start
LH: loop header
LB: loop body
LE: loop exit
PB: predicated region body
PF: predicated region fallthrough
CT: control target
= control target key end

     0   :  { %7 = vsyncpa [#allocation5], 0  ;;  %s673_s0 = inlined_call_operand.hbm [shape: f32[2,8,256], index: 0, kind: input, shape index: {}]   ;;  %s674_s1 = inlined_call_operand.vmem [shape: f32[8,2], index: 1, kind: input, shape index: {}]   ;;  %s675_s2 = inlined_call_operand.hbm [shape: f32[2,1,2], index: 2, kind: output, shape index: {}]  }
   0x1   :  { %9 = vsyncpa [#allocation5 + $0x1], 0 }
   0x2   :  { %10 = vsyncpa [#allocation6], 0 }
   0x3   :  { %12 = vsyncpa [#allocation6 + $0x1], 0  ;;  %s532_s9 = smov 0   ;;  %s534_s10 = smov 0  }
   0x4   :  { %s536_s11 = smov 0   ;;  %s538_s12 = smov 0  }
   0x5   :  { %s540_s13 = smov 0   ;;  %s542_s14 = smov 0  }
   0x6 LB: > { %s326_s15 = sadd.s32 4294967295, %s513_s14   ;;  %s327_s16 = sadd.s32 4294967294, %s513_s14   ;;  %s513_s14 = sphi %s542_s14, %s18_s14   ;;  %s509_s13 = sphi %s540_s13, %s687_s13   ;;  %s505_s12 = sphi %s538_s12, %s686_s12   ;;  %s501_s11 = sphi %s536_s11, %s685_s11   ;;  %s497_s10 = sphi %s534_s10, %s684_s10   ;;  %s493_s9 = sphi %s532_s9, %s683_s9  }
   0x7   : > { %s30_s17 = sadd.s32 1, %s509_s13  ;;  %s39_s18 = sadd.s32 1, %s501_s11 }
   0x8   : > { %p32_p0 = scmp.ge.s32.totalorder %s30_s17, 2  ;;  %p46_p1 = scmp.ne.s32.totalorder %s501_s11, %s497_s10 }
   0x9   : > { %p47_p2 = scmp.eq.s32.totalorder %s513_s14, 0  ;;  %p52_p3 = scmp.ne.s32.totalorder %s497_s10, %s493_s9 }
   0xa   : > { %s689_s17 = smov (%p32_p0, %s30_s17), 0  ;;  %p53_p5 = scmp.eq.s32.totalorder %s326_s15, 0 }
   0xb   : > { %p573_p4 = por %p47_p2, %p46_p1  ;;  %s34_s20 = ssub.s32 %s509_s13, %s689_s17 }
   0xc   : > { %p97_p6 = scmp.eq.s32.totalorder %s326_s15, 1  ;;  %p37_p7 = scmp.eq.s32.totalorder %s34_s20, 0 }
   0xd   : > { %p579_p8 = por %p53_p5, %p52_p3  ;;  %p103_p10 = scmp.eq.s32.totalorder %s327_s16, 1 }
   0xe   : > { %p583_p9 = por %p97_p6, %p46_p1  ;;  %p351_p13 = scmp.lt.s32.totalorder %s513_s14, 2 }
   0xf   : > { %s588_s23 = scalar_select %p37_p7, %s501_s11, %s39_s18  }
  0x10   : > { %p590_p11 = por %p103_p10, %p52_p3  ;;  %s126_s25 = sand.u32 1, %s501_s11  }
  0x11   : > { %s330_s26 = sshll.u32 %s126_s25, 4  ;;  %s338_s27 = sshll.u32 %s509_s13, 8 }
  0x12   : > { %s679_s24 = scalar_select %p590_p11, 1, 0 }
  0x13   : > { %s138_s30 = scalar_lea.hbm %s673_s0, %s338_s27  ;;  %s130_s3 = scalar_lea.vmem [#allocation4], %s330_s26 }
  0x14   : > { %s140_s4 = sshll.u32 %s130_s3, 4  ;;  %p603_p0 = pnand %p351_p13, %p573_p4  ;;  %s141_s4 = int_to_ptr.vmem [resolvable:$true] %s140_s4 }
  0x15   : > { %p333_p1 = scmp.ge.s32.totalorder %s513_s14, 1  ;;  %p145_p2 = scmp.lt.s32.totalorder %s513_s14, 3 }
  0x16   : > { %s127_s6 = scalar_lea.sflag [#allocation5], %s126_s25  ;;  %p407_p3 = pneg %p603_p0 }
  0x17   : > { %s418_s7 = scalar_lea.vmem %s141_s4, 256  ;;  %s515_s8 = smov [#allocation4]  }
  0x18   : > { %p419_p5 = scmp.ne.s32.totalorder %s141_s4, %s418_s7  ;;  %s423_s15 = sshll.u32 %s515_s8, 4  ;;  %s424_s15 = int_to_ptr.vmem [resolvable:$false] %s423_s15 }
  0x19   : > { %s425_s16 = scalar_lea.vmem %s424_s15, 512  ;;  %p426_p10 = scmp.lt.s32.totalorder %s141_s4, %s424_s15 }
  0x1a   : > { %p421_p6 = pnand %p419_p5, %p407_p3  ;;  %p427_p12 = scmp.lt.s32.totalorder %s425_s16, %s418_s7 }
  0x1c   : > { %p422_p7 = pneg %p421_p6  ;;  %p428_p4 = por %p427_p12, %p426_p10 }
  0x1e   : > { %p429_p13 = pnand %p428_p4, %p422_p7 }
  0x20   : > { %432 = shalt.err (!%p429_p13)
}
  0x21   : > { %346 = dma.hbm_to_vmem [thread:$0]  (!%p603_p0), %s138_s30, 256, %s141_s4, %s127_s6  }
  0x22   : > { %p146_p11 = pnand %p333_p1, %p145_p2 }
  0x23   : > { %s618_s18 = sand.u32 (!%p146_p11), 1, %s497_s10  }
  0x24   : > { %149 = sbr.rel (%p146_p11) target bundleno = 529 (0x211), region = 28  ;;  %s334_s19 = sshll.u32 (!%p146_p11), %s618_s18, 4 }
  0x25   : > { %s152_s20 = scalar_lea.sflag (!%p146_p11), [#allocation5], %s618_s18  ;;  %s155_s25 = scalar_lea.vmem (!%p146_p11), [#allocation4], %s334_s19 }
  0x29   : > { %484 = dma.done.wait (%p579_p8), %s152_s20, 256  }
  0x2a   : > { %486 = vsyncadd (%p579_p8), %s152_s20, 4294967040  ;;  %v184_v0 = vld [vmem:[%s155_s25] sm:$0xff]  ;;  %v185_v1 = vld [vmem:[%s155_s25 + $0x8] sm:$0xff]  ;;  %vm215_vm0 = vcmask 15360   ;;  %s335_s21 = sshll.u32 %s505_s12, 4  ;;  %s174_s28 = scalar_lea.vmem [#allocation7], %s618_s18 }
  0x2b   : > { %v208_v2 = vadd.f32 %v185_v1, %v184_v0  ;;  %v203_v3 = vmax.f32 %v184_v0, %v185_v1  ;;  %v213_v6 = vld [vmem:[%s674_s1] sm:$0xff]  ;;  %s249_s29 = sshll.u32 %s174_s28, 4  ;;  %vm234_vm1 = vcmask 8192   ;;  %s247_s4 = scalar_lea.hbm %s675_s2, %s335_s21  ;;  %s250_s29 = int_to_ptr.vmem [resolvable:$true] %s249_s29 }
  0x2c   : > { %s237_s5 = scalar_lea.sflag [#allocation6], %s618_s18  ;;  %s433_s6 = scalar_lea.vmem %s250_s29, 16 }
  0x2d   : > { %209 = vadd.xlane.f32.xlu0 %v208_v2  ;;  %p434_p8 = scmp.ne.s32.totalorder %s250_s29, %s433_s6  ;;  %s516_s7 = smov [#allocation7]  }
  0x2e   : > { %s437_s8 = sshll.u32 %s516_s7, 4  ;;  %s438_s8 = int_to_ptr.vmem [resolvable:$false] %s437_s8 }
  0x2f   : > { %p435_p11 = pnand %p434_p8, %p583_p9  ;;  %s439_s12 = scalar_lea.vmem %s438_s8, 32 }
  0x30   : > { %p440_p0 = scmp.lt.s32.totalorder %s250_s29, %s438_s8  ;;  %p441_p1 = scmp.lt.s32.totalorder %s439_s12, %s433_s6 }
  0x31   : > { %204 = vmax.xlane.f32.xlu0 %v203_v3  ;;  %p436_p12 = pneg %p435_p11 }
  0x32   : > { %p442_p2 = por %p441_p1, %p440_p0 }
  0x34   : > { %p443_p3 = pnand %p442_p2, %p436_p12 }
  0xb6   : > { %v210_v4 = vpop.xlane.xlu0 %209 }
  0xb7   : > { %v211_v5 = vmul.f32 0.00390625, %v210_v4 }
  0xba   : > { %v205_v7 = vpop.xlane.xlu0 %204 }
  0xbb   : > { %v212_v8 = vadd.f32 %v211_v5, %v205_v7 }
  0xbd   : > { %v214_v9 = vmul.f32 %v213_v6, %v212_v8 }
  0xbf   : > { %v216_v10 = vsel %vm215_vm0, %v214_v9, 0.0 }
  0xc0   : > { %v217_v11 = vrot.slane %v216_v10, 4 }
  0xc2   : > { %v218_v12 = vadd.f32 %v217_v11, %v216_v10 }
  0xc4   : > { %v219_v13 = vrot.slane %v218_v12, 2 }
  0xc6   : > { %v220_v14 = vadd.f32 %v219_v13, %v218_v12 }
  0xc8   : > { %v221_v15 = vrot.slane %v220_v14, 1 }
  0xca   : > { %v222_v16 = vadd.f32 %v221_v15, %v220_v14 }
  0xcc   : > { %v223_v17 = vsel %vm215_vm0, %v222_v16, -inf }
  0xcd   : > { %224 = vmax.xlane.f32.xlu1 %v223_v17 }
 0x156   : > { %v225_v18 = vpop.xlane.xlu1 %224 }
 0x157   : > { %v226_v19 = vsub.f32 %v222_v16, %v225_v18 }
 0x159   : > { %v227_v20 = vmul.f32 1.442695, %v226_v19 }
 0x15b   : > { %401 = vpow2.f32 %v227_v20 }
 0x168   : > { %v402_v21 = vpop.eup %401 }
 0x169   : > { %v229_v22 = vsel %vm215_vm0, %v402_v21, 0.0 }
 0x16a   : > { %230 = vadd.xlane.f32.xlu1 %v229_v22 }
 0x1f3   : > { %v231_v23 = vpop.xlane.xlu1 %230 }
 0x1f4   : > { %403 = vrcp.f32 %v231_v23 }
 0x201   : > { %v404_v24 = vpop.eup %403 }
 0x202   : > { %v233_v25 = vmul.f32 %v404_v24, %v402_v21 }
 0x204   : > { %235 = vst.msk [vmem:[%s174_s28] sm:$0x1] %vm234_vm1, %v233_v25 }
 0x205   : > { %446 = shalt.err (!%p443_p3)
}
 0x206   : > { %s447_s15 = scalar_lea.hbm %s247_s4, 16  ;;  %s451_s19 = scalar_lea.hbm %s675_s2, 32 }
 0x207   : > { %p448_p5 = scmp.ne.s32.totalorder %s247_s4, %s447_s15  ;;  %p452_p10 = scmp.lt.s32.totalorder %s247_s4, %s675_s2 }
 0x208   : > { %p453_p4 = scmp.lt.s32.totalorder %s451_s19, %s447_s15 }
 0x209   : > { %p449_p6 = pnand %p448_p5, %p583_p9 }
 0x20a   : > { %p454_p13 = por %p453_p4, %p452_p10 }
 0x20b   : > { %p450_p7 = pneg %p449_p6 }
 0x20d   : > { %p455_p8 = pnand %p454_p13, %p450_p7 }
 0x20f   : > { %458 = shalt.err (!%p455_p8)
}
 0x210   : > { %341 = dma.vmem_to_hbm [thread:$0]  (%p583_p9), %s250_s29, 16, %s247_s4, %s237_s5  }
 0x211 PF: > { %s261_s26 = sand.u32 1, %s493_s9   ;;  %p681_p11 = scmp.ne.s32.totalorder %s679_s24, 0 }
 0x212   : > { %p682_p12 = scmp.ge.s32.totalorder %s513_s14, 2  ;;  %s262_s27 = scalar_lea.sflag [#allocation6], %s261_s26 }
 0x214   : > { %p348_p0 = pnand %p682_p12, %p681_p11 }
 0x216   : > { %p349_p1 = pneg %p348_p0 }
 0x218   : > { %488 = dma.done.wait (%p349_p1), %s262_s27, 16  }
 0x219   : > { %490 = vsyncadd (%p349_p1), %s262_s27, 4294967280  ;;  %s18_s14 = sadd.s32 1, %s513_s14   ;;  %s683_s9 = smov %s497_s10 }
 0x21a   : > { %p15_p2 = scmp.ge.s32.totalorder %s18_s14, 4   ;;  %s684_s10 = smov %s501_s11 }
 0x21b   : > { %s685_s11 = smov %s588_s23  ;;  %s686_s12 = smov %s509_s13 }
 0x21c   : > { %s687_s13 = smov %s689_s17  ;;  %17 = sbr.rel (!%p15_p2) target bundleno = 6 (0x6), region = 81 }
 0x221   :  { %266 = vsyncpa [#allocation5], 1 }
 0x222   :  { %268 = vsyncpa [#allocation5 + $0x1], 1 }
 0x223   :  { %269 = vsyncpa [#allocation6], 1 }
 0x224   :  { %271 = vsyncpa [#allocation6 + $0x1], 1 }

</bundles_post_ra>
